<compile_context>
chip_gen: v7x
topology: tpu7x:2x2x1
jax: 0.10.0
libtpu: 0.0.40
codegen_flags: <defaults>
</compile_context>

<pallas_src>
import functools
import math

import jax
import jax.numpy as jnp
from jax import lax
from jax.experimental import pallas as pl
from jax.experimental.pallas import tpu as pltpu


def _round_up(x, m):
    return (x + m - 1) // m * m


def _normal_tile(shape):
    """Draw N(0,1) samples of `shape` from the TPU stateful PRNG (prng_seed first)."""
    if hasattr(pltpu, "stateful_normal"):
        return pltpu.stateful_normal(shape, jnp.float32)
    # Fallback Box-Muller: reuse both cos and sin halves so one (log, sqrt) pair and one
    # pair of bit draws produce two output rows (halves EUP + PRNG work vs. cos-only).
    half = (shape[0] // 2, shape[1])
    b1 = pltpu.prng_random_bits(half)
    b2 = pltpu.prng_random_bits(half)
    mask24 = jnp.array(0xFFFFFF, dtype=b1.dtype)
    u1 = ((b1 & mask24).astype(jnp.float32) + 1.0) * (1.0 / float(1 << 24))  # (0, 1]
    u2 = (b2 & mask24).astype(jnp.float32) * (1.0 / float(1 << 24))          # [0, 1)
    r = jnp.sqrt(-2.0 * jnp.log(u1))
    theta = (2.0 * math.pi) * u2
    return jnp.concatenate([r * jnp.cos(theta), r * jnp.sin(theta)], axis=0)


def _pad_mask(tgt_ref, pad_idx, emb_size, group, out_shape):
    """(rows, W) bool mask: True where the lane belongs to a PAD token."""
    if group == 1:
        return tgt_ref[...] == pad_idx               # (rows, 1), broadcasts over W
    # Packed layout: lane l of row r belongs to token group l // emb_size.
    # emb_size divides 128 here, so it is a power of two -> use a shift, not a divide.
    shift = int(math.log2(emb_size))
    lane = lax.broadcasted_iota(jnp.int32, out_shape, 1)
    grp = lane >> shift
    tok = tgt_ref[:, 0:1]
    for g in range(1, group):
        tok = jnp.where(grp == g, tgt_ref[:, g:g + 1], tok)
    return tok == pad_idx


def _sen_emb_kernel_tpu(emb_size, group, scalars_ref, tgt_ref, pad_ref, out_ref):
    """TPU path: normals generated in-kernel with the stateful hardware PRNG.

    scalars_ref : SMEM (2,) int32  -> [seed, pad_idx]
    tgt_ref     : VMEM (TILE, G) int32 token indices (G tokens packed per output row)
    pad_ref     : VMEM (1, W) float32 PadEmbedding tiled G times along lanes
    out_ref     : VMEM (TILE, W) float32
    """
    pltpu.prng_seed(scalars_ref[0] + pl.program_id(0))   # per-step seed -> steps independent
    pad_idx = scalars_ref[1]
    noise = _normal_tile(out_ref.shape)
    is_pad = _pad_mask(tgt_ref, pad_idx, emb_size, group, out_ref.shape)
    out_ref[...] = jnp.where(is_pad, pad_ref[...], noise)


def _sen_emb_kernel_noise(emb_size, group, scalars_ref, tgt_ref, pad_ref, noise_ref, out_ref):
    """Non-TPU / interpret fallback: normals are supplied, kernel fuses the select only."""
    pad_idx = scalars_ref[1]
    is_pad = _pad_mask(tgt_ref, pad_idx, emb_size, group, out_ref.shape)
    out_ref[...] = jnp.where(is_pad, pad_ref[...], noise_ref[...])


def sen_embedding(tgt, pad_idx, pad_embedding, seed=0):
    """JAX wrapper: tgt (S, B) int -> (S, B, E) float32."""
    S, B = tgt.shape
    E = int(pad_embedding.shape[0])
    N = S * B

    # Lane-dense packing: if E divides 128, pack G tokens per 128-lane output row.
    if E < 128 and 128 % E == 0:
        G = 128 // E
    else:
        G = 1
    W = E * G

    # Row tile: large enough to amortize ~0.35 us/step pipeline overhead, capped at
    # ~2 MiB per block so double-buffered blocks fit every generation's VMEM budget
    # (v5e 16 MiB scoped default, v7x 64 MiB physical).
    bytes_per_row = W * 4
    cap = max(8, (2 * 1024 * 1024 // bytes_per_row) // 8 * 8)
    rows_needed = -(-N // G)
    tile = min(2048, cap, _round_up(rows_needed, 8))
    R = _round_up(rows_needed, tile)
    grid = (R // tile,)

    # Flatten (S, B) row-major (same order as the PyTorch list comprehension), pad to
    # R*G tokens with PAD_IDX (padding is sliced away), reshape to (R, G).
    tgt_flat = tgt.reshape(-1).astype(jnp.int32)
    tgt_flat = jnp.pad(tgt_flat, (0, R * G - N), constant_values=pad_idx)
    tgt2d = tgt_flat.reshape(R, G)

    pad_row = jnp.tile(pad_embedding.astype(jnp.float32), G).reshape(1, W)
    scalars = jnp.array([seed, pad_idx], dtype=jnp.int32)

    out_spec = pl.BlockSpec((tile, W), lambda i: (i, 0))
    tgt_spec = pl.BlockSpec((tile, G), lambda i: (i, 0))
    pad_spec = pl.BlockSpec((1, W), lambda i: (0, 0))        # constant block: stays resident
    smem_spec = pl.BlockSpec(memory_space=pltpu.MemorySpace.SMEM)

    if jax.default_backend() == "tpu":
        kernel = functools.partial(_sen_emb_kernel_tpu, E, G)
        in_specs = [smem_spec, tgt_spec, pad_spec]
        args = (scalars, tgt2d, pad_row)
    else:
        # TPU stateful PRNG primitives have no interpreter/CPU lowering.
        kernel = functools.partial(_sen_emb_kernel_noise, E, G)
        noise = jax.random.normal(jax.random.PRNGKey(seed), (R, W), dtype=jnp.float32)
        in_specs = [smem_spec, tgt_spec, pad_spec, pl.BlockSpec((tile, W), lambda i: (i, 0))]
        args = (scalars, tgt2d, pad_row, noise)

    out_packed = pl.pallas_call(
        kernel,
        out_shape=jax.ShapeDtypeStruct((R, W), jnp.float32),
        grid_spec=pltpu.PrefetchScalarGridSpec(
            num_scalar_prefetch=0,
            grid=grid,
            in_specs=in_specs,
            out_specs=out_spec,
        ),
        compiler_params=pltpu.CompilerParams(
            dimension_semantics=("parallel",),        # per-step reseed -> independent steps
            vmem_limit_bytes=32 * 1024 * 1024,
        ),
    )(*args)

    # (R, W) row-major is token-major, emb-minor -> plain reshapes recover (S, B, E).
    return out_packed.reshape(-1)[: N * E].reshape(S, B, E)


if __name__ == "__main__":
    import numpy as np

    key = jax.random.PRNGKey(0)
    k_pad, k_tgt = jax.random.split(key)

    S, B, E = 8, 2, 32           # (max sentences, batch, emb_size)
    PAD_IDX = 1

    # Module __init__: self.PadEmbedding = torch.randn(emb_size)  (deterministic here).
    pad_embedding = jax.random.normal(k_pad, (E,), dtype=jnp.float32)
    # Example input: sentence indices, some of which equal PAD_IDX.
    tgt = jax.random.randint(k_tgt, (S, B), 0, 4, dtype=jnp.int32)

    out = sen_embedding(tgt, PAD_IDX, pad_embedding, seed=0)
    out = jax.block_until_ready(out)

    assert out.shape == (S, B, E), out.shape
    assert out.dtype == jnp.float32

    out_np = np.asarray(out)
    tgt_np = np.asarray(tgt)
    pad_np = np.asarray(pad_embedding)

    # Every PAD position must carry exactly the PadEmbedding.
    pad_positions = tgt_np == PAD_IDX
    if pad_positions.any():
        assert np.allclose(out_np[pad_positions], pad_np, atol=1e-6)
    # Non-pad positions are fresh random draws and must not all equal PadEmbedding.
    nonpad = ~pad_positions
    if nonpad.any():
        assert not np.allclose(out_np[nonpad], pad_np)
        assert np.isfinite(out_np).all()

    print("KERNEL_OK")
</pallas_src>

<mosaic_0001>
module attributes {stable_mosaic.version = 11 : i64} {
  func.func @_sen_emb_kernel_noise(%arg0: i32, %arg1: memref<2xi32, #tpu.memory_space<smem>>, %arg2: memref<8x4xi32, #tpu.memory_space<vmem>>, %arg3: memref<1x128xf32, #tpu.memory_space<vmem>>, %arg4: memref<8x128xf32, #tpu.memory_space<vmem>>, %arg5: memref<8x128xf32, #tpu.memory_space<vmem>>) attributes {dimension_semantics = [#tpu.dimension_semantics<parallel>], iteration_bounds = array<i64: 1>, scalar_prefetch = 0 : i64, scratch_operands = 0 : i64, tpu.core_type = #tpu.core_type<tc>, window_params = [{transform_indices = @transform_0, window_bounds = array<i64: 2>}, {transform_indices = @transform_1, window_bounds = array<i64: 8, 4>}, {pipeline_mode = #tpu.pipeline_mode<synchronous>, transform_indices = @transform_2, window_bounds = array<i64: 1, 128>}, {transform_indices = @transform_3, window_bounds = array<i64: 8, 128>}, {transform_indices = @transform_4, window_bounds = array<i64: 8, 128>}]} {
    %c1 = arith.constant 1 : index
    %0 = memref.load %arg1[%c1] : memref<2xi32, #tpu.memory_space<smem>>
    %1 = tpu.iota {dimensions = array<i32: 1>} : vector<8x128xi32>
    %c5_i32 = arith.constant 5 : i32
    %2 = vector.broadcast %c5_i32 : i32 to vector<8x128xi32>
    %3 = arith.shrsi %1, %2 : vector<8x128xi32>
    %c0 = arith.constant 0 : index
    %c0_0 = arith.constant 0 : index
    %4 = vector.load %arg2[%c0, %c0_0] : memref<8x4xi32, #tpu.memory_space<vmem>>, vector<8x1xi32>
    %c1_i32 = arith.constant 1 : i32
    %5 = vector.broadcast %c1_i32 : i32 to vector<8x128xi32>
    %6 = arith.cmpi eq, %3, %5 : vector<8x128xi32>
    %c0_1 = arith.constant 0 : index
    %c1_2 = arith.constant 1 : index
    %7 = vector.load %arg2[%c0_1, %c1_2] : memref<8x4xi32, #tpu.memory_space<vmem>>, vector<8x1xi32>
    %8 = vector.shape_cast %7 : vector<8x1xi32> to vector<8x1xi32>
    %9 = vector.broadcast %8 : vector<8x1xi32> to vector<8x128xi32>
    %10 = vector.shape_cast %4 : vector<8x1xi32> to vector<8x1xi32>
    %11 = vector.broadcast %10 : vector<8x1xi32> to vector<8x128xi32>
    %12 = arith.select %6, %9, %11 : vector<8x128xi1>, vector<8x128xi32>
    %c2_i32 = arith.constant 2 : i32
    %13 = vector.broadcast %c2_i32 : i32 to vector<8x128xi32>
    %14 = arith.cmpi eq, %3, %13 : vector<8x128xi32>
    %c0_3 = arith.constant 0 : index
    %c2 = arith.constant 2 : index
    %15 = vector.load %arg2[%c0_3, %c2] : memref<8x4xi32, #tpu.memory_space<vmem>>, vector<8x1xi32>
    %16 = vector.shape_cast %15 : vector<8x1xi32> to vector<8x1xi32>
    %17 = vector.broadcast %16 : vector<8x1xi32> to vector<8x128xi32>
    %18 = arith.select %14, %17, %12 : vector<8x128xi1>, vector<8x128xi32>
    %c3_i32 = arith.constant 3 : i32
    %19 = vector.broadcast %c3_i32 : i32 to vector<8x128xi32>
    %20 = arith.cmpi eq, %3, %19 : vector<8x128xi32>
    %c0_4 = arith.constant 0 : index
    %c3 = arith.constant 3 : index
    %21 = vector.load %arg2[%c0_4, %c3] : memref<8x4xi32, #tpu.memory_space<vmem>>, vector<8x1xi32>
    %22 = vector.shape_cast %21 : vector<8x1xi32> to vector<8x1xi32>
    %23 = vector.broadcast %22 : vector<8x1xi32> to vector<8x128xi32>
    %24 = arith.select %20, %23, %18 : vector<8x128xi1>, vector<8x128xi32>
    %25 = vector.broadcast %0 : i32 to vector<8x128xi32>
    %26 = arith.cmpi eq, %24, %25 : vector<8x128xi32>
    %c0_5 = arith.constant 0 : index
    %c0_6 = arith.constant 0 : index
    %27 = vector.load %arg3[%c0_5, %c0_6] : memref<1x128xf32, #tpu.memory_space<vmem>>, vector<1x128xf32>
    %c0_7 = arith.constant 0 : index
    %c0_8 = arith.constant 0 : index
    %28 = vector.load %arg4[%c0_7, %c0_8] : memref<8x128xf32, #tpu.memory_space<vmem>>, vector<8x128xf32>
    %29 = vector.shape_cast %27 : vector<1x128xf32> to vector<1x128xf32>
    %30 = vector.broadcast %29 : vector<1x128xf32> to vector<8x128xf32>
    %31 = arith.select %26, %30, %28 : vector<8x128xi1>, vector<8x128xf32>
    %c0_9 = arith.constant 0 : index
    %c0_10 = arith.constant 0 : index
    %32 = vector.load %arg5[%c0_9, %c0_10] : memref<8x128xf32, #tpu.memory_space<vmem>>, vector<8x128xf32>
    tpu.vector_store %arg5[%c0_9, %c0_10], %31 {strides = array<i32>} : memref<8x128xf32, #tpu.memory_space<vmem>>, vector<8x128xf32>,
    return
  }
  func.func @transform_0(%arg0: i32) -> i32 {
    %c0_i32 = arith.constant 0 : i32
    %c0_i32_0 = arith.constant 0 : i32
    return %c0_i32 : i32
  }
  func.func @transform_1(%arg0: i32) -> (i32, i32) {
    %c0_i32 = arith.constant 0 : i32
    %c0_i32_0 = arith.constant 0 : i32
    return %arg0, %c0_i32 : i32, i32
  }
  func.func @transform_2(%arg0: i32) -> (i32, i32) {
    %c0_i32 = arith.constant 0 : i32
    %c0_i32_0 = arith.constant 0 : i32
    %c0_i32_1 = arith.constant 0 : i32
    return %c0_i32, %c0_i32_0 : i32, i32
  }
  func.func @transform_3(%arg0: i32) -> (i32, i32) {
    %c0_i32 = arith.constant 0 : i32
    %c0_i32_0 = arith.constant 0 : i32
    return %arg0, %c0_i32 : i32, i32
  }
  func.func @transform_4(%arg0: i32) -> (i32, i32) {
    %c0_i32 = arith.constant 0 : i32
    %c0_i32_0 = arith.constant 0 : i32
    return %arg0, %c0_i32 : i32, i32
  }
}

</mosaic_0001>

<bundles_post_ra>
// kernel: tpu_custom_call.1
= control target key start
LH: loop header
LB: loop body
LE: loop exit
PB: predicated region body
PF: predicated region fallthrough
CT: control target
= control target key end

     0   :  { %9 = vsyncpa [#allocation4], 0  ;;  %s187_s0 = inlined_call_operand.vmem [shape: s32[2], index: 0, kind: input, shape index: {}]   ;;  %s188_s1 = inlined_call_operand.vmem [shape: s32[8,4], index: 1, kind: input, shape index: {}]   ;;  %s189_s2 = inlined_call_operand.vmem [shape: f32[1,128], index: 2, kind: input, shape index: {}]   ;;  %s190_s3 = inlined_call_operand.vmem [shape: f32[8,128], index: 3, kind: input, shape index: {}]   ;;  %s191_s4 = inlined_call_operand.hbm [shape: f32[8,128], index: 4, kind: output, shape index: {}]  }
   0x1   :  { %10 = vsyncpa [#allocation3], 0  ;;  %s17_s17 = sshll.u32 %s187_s0, 4  ;;  %s18_s17 = int_to_ptr.vmem [resolvable:$true] %s17_s17 }
   0x2   :  { %s94_s18 = scalar_lea.vmem %s18_s17, 16  ;;  %p99_p1 = scmp.lt.s32.totalorder %s18_s17, %s18_s17 }
   0x3   :  { %p95_p0 = scmp.ne.s32.totalorder %s18_s17, %s94_s18  ;;  %p100_p2 = scmp.lt.s32.totalorder %s94_s18, %s94_s18 }
   0x5   :  { %p101_p3 = por %p100_p2, %p99_p1 }
   0x7   :  { %p102_p4 = pnand %p101_p3, %p95_p0 }
   0x9   :  { %105 = shalt.err (!%p102_p4)
}
   0xa   :  { %s132_s19 = smov [#allocation2]  }
   0xb   :  { %20 = dma.vmem_to_smem %s18_s17, 16, %s132_s19, [#allocation4]  }
   0xc   :  { %128 = dma.done.wait [#allocation4], 16  }
   0xd   :  { %129 = vsyncadd [#allocation4], 4294967280 }
   0xe   :  { %30 = sfence }
   0xf   :  { %v35_v0 = vld [vmem:[%s188_s1] sm:$0xff]  ;;  %v133_v1 = vmov 1   ;;  %v134_v2 = vmov 2   ;;  %v135_v3 = vmov 0   ;;  %v136_v4 = vmov 3   ;;  %s81_s0 = sld [smem:[#allocation2 + $0x1]] }
  0x10   :  { %89 = vset.pattern.permute.xlu0 %v133_v1  ;;  %91 = vset.pattern.permute.xlu1 %v134_v2  ;;  %v32_v5 = vlaneseq  ;;  %s137_s1 = smov [#allocation5]   ;;  %v82_v15 = vld [vmem:[%s189_s2] ss:$0 sm:$0xff] }
  0x11   :  { %38 = vperm.xlu0 %89, %v35_v0   ;;  %46 = vperm.xlu1 %91, %v35_v0   ;;  %s72_s22 = sshll.u32 %s137_s1, 4  ;;  %v57_v16 = vld [vmem:[%s190_s3] sm:$0xff]  ;;  %s73_s22 = int_to_ptr.vmem [resolvable:$true] %s72_s22 }
  0x12   :  { %v33_v6 = vand.u32 127, %v32_v5  ;;  %s106_s27 = scalar_lea.vmem %s73_s22, 128  ;;  %p111_p6 = scmp.lt.s32.totalorder %s73_s22, %s73_s22 }
  0x13   :  { %p107_p5 = scmp.ne.s32.totalorder %s73_s22, %s106_s27  ;;  %p112_p7 = scmp.lt.s32.totalorder %s106_s27, %s106_s27 }
  0x14   :  { %v34_v7 = vshra.s32 %v33_v6, 5 }
  0x15   :  { %90 = vset.pattern.permute.xlu0 %v135_v3  ;;  %92 = vset.pattern.permute.xlu1 %v136_v4  ;;  %v54_v13 = vstv %s81_s0  ;;  %p113_p8 = por %p112_p7, %p111_p6 }
  0x16   :  { %41 = vperm.xlu0 %90, %v35_v0   ;;  %51 = vperm.xlu1 %92, %v35_v0   ;;  %vm36_vm0 = vcmp.eq.s32.totalorder %v34_v7, 1  ;;  %vm44_vm1 = vcmp.eq.s32.totalorder %v34_v7, 2  ;;  %vm49_vm2 = vcmp.eq.s32.totalorder %v34_v7, 3 }
  0x17   :  { %p114_p9 = pnand %p113_p8, %p107_p5 }
  0x1a   :  { %93 = vset.pattern.permute.xlu0 %v136_v4 }
  0x90   :  { %v39_v8 = vpop.permute.xlu0 %38  ;;  %v47_v9 = vpop.permute.xlu1 %46 }
  0x95   :  { %v42_v10 = vpop.permute.xlu0 %41  ;;  %v52_v11 = vpop.permute.xlu1 %51 }
  0x96   :  { %v43_v12 = vsel %vm36_vm0, %v39_v8, %v42_v10 }
  0x97   :  { %v48_v14 = vsel %vm44_vm1, %v47_v9, %v43_v12 }
  0x98   :  { %v53_v17 = vsel %vm49_vm2, %v52_v11, %v48_v14 }
  0x99   :  { %vm55_vm3 = vcmp.eq.s32.totalorder %v53_v17, %v54_v13 }
  0x9a   :  { %v64_v18 = vsel %vm55_vm3, %v82_v15, %v57_v16 }
  0x9b   :  { %65 = vst [vmem:[#allocation5] sm:$0xff] %v64_v18 }
  0x9c   :  { %117 = shalt.err (!%p114_p9)
}
  0x9d   :  { %s118_s2 = scalar_lea.hbm %s191_s4, 128 }
  0x9e   :  { %p119_p10 = scmp.ne.s32.totalorder %s191_s4, %s118_s2  ;;  %p122_p11 = scmp.lt.u32.totalorder %s118_s2, %s191_s4 }
  0xa0   :  { %p124_p12 = pnand %p122_p11, %p119_p10 }
  0xa2   :  { %127 = shalt.err (!%p124_p12)
}
  0xa3   :  { %75 = dma.vmem_to_hbm [thread:$0]  %s73_s22, 128, %s191_s4, [#allocation3]  }
  0xa4   :  { %130 = dma.done.wait [#allocation3], 128  }
  0xa5   :  { %131 = vsyncadd [#allocation3], 4294967168 }
  0xa6   :  { %79 = vsyncpa [#allocation3], 1 }
  0xa7   :  { %80 = vsyncpa [#allocation4], 1 }

</bundles_post_ra>
